<compile_context>
chip_gen: v7x
topology: tpu7x:2x2x1
jax: 0.10.0
libtpu: 0.0.40
codegen_flags: <defaults>
</compile_context>

<pallas_src>
import math
import functools

import numpy as np
import jax
import jax.numpy as jnp
from jax.experimental import pallas as pl
from jax.experimental.pallas import tpu as pltpu


def _round_up(x, m):
    return ((x + m - 1) // m) * m


def _is_multi_tensorcore_chip():
    """True on chips with >1 TensorCore per chip (v7x)."""
    try:
        kind = jax.devices()[0].device_kind.lower()
        return ("v7" in kind) or ("7x" in kind)
    except Exception:
        return False


# --------------------------------------------------------------------------
# Kernel
# --------------------------------------------------------------------------
def _predictor_kernel(x_ref, w_ref, b_ref, out_ref):
    """Fused two-head linear kernel for one tile of N rows.

    x_ref:   (TILE_N, C)        input features (VMEM)
    w_ref:   (C, OUT_PAD)       fused [cls | bbox | zero-pad] weights, (in, out)
    b_ref:   (1, OUT_PAD)       fused biases (f32, zero-padded)
    out_ref: (TILE_N, OUT_PAD)  fused output, lane-dense (OUT_PAD % 128 == 0)
    """
    acc = jnp.dot(x_ref[...], w_ref[...], preferred_element_type=jnp.float32)
    out_ref[...] = (acc + b_ref[...]).astype(out_ref.dtype)


# --------------------------------------------------------------------------
# One-time parameter prep (keep out of the per-call hot path)
# --------------------------------------------------------------------------
def prepare_predictor_params(w_cls, b_cls, w_bbox, b_bbox,
                             compute_dtype=jnp.bfloat16, out_dtype=None):
    """Fuse the two heads into one pre-transposed, lane-padded weight slab."""
    num_classes, c = w_cls.shape
    num_bbox = w_bbox.shape[0]
    out_total = num_classes + num_bbox
    out_pad = _round_up(out_total, 128)                 # lane-dense unmasked store

    w_fused = jnp.concatenate([w_cls.T, w_bbox.T], axis=1)          # (C, out_total)
    w_fused = jnp.pad(w_fused, ((0, 0), (0, out_pad - out_total)))  # (C, OUT_PAD)
    b_fused = jnp.concatenate([b_cls, b_bbox]).reshape(1, out_total)
    b_fused = jnp.pad(b_fused, ((0, 0), (0, out_pad - out_total)))  # (1, OUT_PAD)

    if compute_dtype is not None:
        w_fused = w_fused.astype(compute_dtype)
    if out_dtype is None:
        out_dtype = compute_dtype if compute_dtype is not None else jnp.float32

    return {
        "w_fused": w_fused,
        "b_fused": b_fused.astype(jnp.float32),   # bias add stays f32 (v5e VPU has no bf16)
        "num_classes": int(num_classes),
        "num_bbox": int(num_bbox),
        "in_channels": int(c),
        "out_pad": int(out_pad),
        "out_dtype": np.dtype(out_dtype),
    }


# --------------------------------------------------------------------------
# Tile selection (pure Python, runs outside jit)
# --------------------------------------------------------------------------
def _choose_tile_n(n, c, x_itemsize, w_itemsize, out_pad, out_itemsize,
                   tile_n_max=1024):
    # Native sublane packing: 8 rows (f32), 16 (bf16), 32 (int8/fp8).
    row_align = max(8, 32 // int(x_itemsize))
    n = max(int(n), 1)

    if n <= row_align:
        # Single full-extent block (block_shape == full array dim is always legal).
        return n

    # Largest aligned tile that (a) respects tile_n_max, (b) never exceeds N
    # (so the partial trailing block stays within the array), (c) fits VMEM.
    cap = max(row_align, (int(tile_n_max) // row_align) * row_align)
    tile = min(cap, (n // row_align) * row_align)

    def vmem_bytes(t):
        return (2 * t * c * x_itemsize              # x tile, double buffered
                + 2 * t * out_pad * out_itemsize    # out tile, double buffered
                + 2 * c * out_pad * w_itemsize      # fused W (resident, 2 bufs)
                + 2 * out_pad * 4)                  # fused bias (f32)

    budget = 12 << 20   # safe under v5e's 16 MiB scoped-VMEM default
    while tile > row_align and vmem_bytes(tile) > budget:
        tile = max(row_align, _round_up(tile // 2, row_align))

    # v7x: 2 TensorCores + "parallel" grid axis -> keep >= 2 grid steps so the
    # second core (and a second HBM DMA stream) gets work.  Irrelevant on
    # v5e/v6e (1 TC), so gated on chip generation.
    if _is_multi_tensorcore_chip() and n >= 2 * row_align and pl.cdiv(n, tile) < 2:
        tile = max(row_align, _round_up(pl.cdiv(n, 2), row_align))

    return tile


# --------------------------------------------------------------------------
# Forward
# --------------------------------------------------------------------------
@functools.partial(jax.jit, static_argnames=("num_classes", "num_bbox", "tile_n",
                                             "out_dtype", "return_slab"))
def _predictor_forward_impl(x2, w_fused, b_fused, *, num_classes, num_bbox,
                            tile_n, out_dtype, return_slab):
    n, c = x2.shape
    out_pad = w_fused.shape[1]
    out_total = num_classes + num_bbox

    # Ragged N handled by a partial trailing block: grid = cdiv(n, tile_n).
    # Rows >= n in the last block are garbage-in/garbage-out but are never
    # written back (out-of-bounds stores are dropped), and each matmul row is
    # independent, so valid rows are unaffected.
    grid = (pl.cdiv(n, tile_n),)

    cost = pl.CostEstimate(
        flops=2 * n * c * out_total,
        transcendentals=0,
        bytes_accessed=(n * c * x2.dtype.itemsize
                        + c * out_pad * w_fused.dtype.itemsize
                        + out_pad * b_fused.dtype.itemsize
                        + n * out_pad * np.dtype(out_dtype).itemsize),
    )

    fused_out = pl.pallas_call(
        _predictor_kernel,
        out_shape=jax.ShapeDtypeStruct((n, out_pad), out_dtype),
        grid=grid,
        in_specs=[
            pl.BlockSpec((tile_n, c), lambda i: (i, 0)),    # x streams over N
            pl.BlockSpec((c, out_pad), lambda i: (0, 0)),   # fused weights, resident
            pl.BlockSpec((1, out_pad), lambda i: (0, 0)),   # fused bias, resident
        ],
        out_specs=pl.BlockSpec((tile_n, out_pad), lambda i: (i, 0)),
        compiler_params=pltpu.CompilerParams(
            dimension_semantics=("parallel",),              # lights up v7x's 2nd TC
        ),
        cost_estimate=cost,
    )(x2, w_fused, b_fused)

    if return_slab:
        # Zero-copy path: caller consumes the lane-dense slab directly
        # (columns [0:num_classes] = scores, [num_classes:out_total] = bbox).
        return fused_out

    # Slices stay inside this jit so XLA fuses them into one program.
    scores = fused_out[:, :num_classes]
    bbox_deltas = fused_out[:, num_classes:out_total]
    return scores, bbox_deltas


def predictor_forward(x, params, tile_n_max=1024, return_fused_slab=False):
    """JAX wrapper matching Predictor.forward semantics.

    x: (N, C) or (N, C, 1, 1); returns (scores, bbox_deltas) unless
    return_fused_slab=True (then returns the (N, OUT_PAD) lane-dense slab).
    Note: each distinct N recompiles (static shapes) -- bucket proposal counts
    (e.g. 512/1000) in a real pipeline to avoid compile churn.
    """
    if x.ndim == 4:
        assert x.shape[2] == 1 and x.shape[3] == 1, "spatial dims must be [1, 1]"
    x2 = x.reshape(x.shape[0], -1)                 # flatten(start_dim=1)

    w = params["w_fused"]
    if x2.dtype != w.dtype:
        # In a real pipeline feed x already in the compute dtype so this cast
        # fuses into the producer instead of adding an HBM pass here.
        x2 = x2.astype(w.dtype)

    n, c = x2.shape
    out_dtype = params["out_dtype"]
    tile_n = _choose_tile_n(
        n, c,
        x_itemsize=x2.dtype.itemsize,
        w_itemsize=w.dtype.itemsize,
        out_pad=params["out_pad"],
        out_itemsize=out_dtype.itemsize,
        tile_n_max=tile_n_max,
    )

    return _predictor_forward_impl(
        x2, w, params["b_fused"],
        num_classes=params["num_classes"], num_bbox=params["num_bbox"],
        tile_n=tile_n, out_dtype=out_dtype, return_slab=return_fused_slab)


# --------------------------------------------------------------------------
# Helpers / self-test
# --------------------------------------------------------------------------
def init_linear_params(key, out_features, in_features, dtype=jnp.float32):
    """PyTorch-default-style init: U(-stdv, stdv), stdv = 1/sqrt(in_features)."""
    stdv = 1.0 / math.sqrt(in_features)
    kw, kb = jax.random.split(key)
    w = jax.random.uniform(kw, (out_features, in_features), dtype,
                           minval=-stdv, maxval=stdv)
    b = jax.random.uniform(kb, (out_features,), dtype,
                           minval=-stdv, maxval=stdv)
    return w, b


if __name__ == "__main__":
    # Small shapes consistent with a FastRCNN box head: in_channels=256,
    # num_classes=8 -> bbox head has 4*8 = 32 outputs.  N=20 is deliberately
    # not tile-aligned so the partial-trailing-block path is exercised.
    N, C, NUM_CLASSES = 20, 256, 8

    key = jax.random.PRNGKey(0)
    kx, kc, kb = jax.random.split(key, 3)

    # Box-head features arrive as (N, C, 1, 1) in FasterRCNN; forward flattens.
    x = jax.random.normal(kx, (N, C, 1, 1), dtype=jnp.float32)
    w_cls, b_cls = init_linear_params(kc, NUM_CLASSES, C)
    w_bbox, b_bbox = init_linear_params(kb, 4 * NUM_CLASSES, C)

    # Plain-JAX reference (same math as torch.nn.Linear).
    x_flat = x.reshape(N, -1)
    ref_scores = x_flat @ w_cls.T + b_cls
    ref_bbox = x_flat @ w_bbox.T + b_bbox

    # ---- f32 path: exactness check of the fused kernel math ----
    params_f32 = prepare_predictor_params(w_cls, b_cls, w_bbox, b_bbox,
                                          compute_dtype=None)
    s32, bb32 = predictor_forward(x, params_f32)
    jax.block_until_ready((s32, bb32))
    assert s32.shape == (N, NUM_CLASSES)
    assert bb32.shape == (N, 4 * NUM_CLASSES)
    assert jnp.allclose(s32, ref_scores, atol=1e-4, rtol=1e-4)
    assert jnp.allclose(bb32, ref_bbox, atol=1e-4, rtol=1e-4)

    # ---- default bf16 path: halves HBM traffic; looser tolerance ----
    params = prepare_predictor_params(w_cls, b_cls, w_bbox, b_bbox)
    scores, bbox_deltas = predictor_forward(x, params)
    jax.block_until_ready((scores, bbox_deltas))
    assert scores.shape == (N, NUM_CLASSES)
    assert bbox_deltas.shape == (N, 4 * NUM_CLASSES)
    assert jnp.allclose(scores.astype(jnp.float32), ref_scores, atol=5e-2, rtol=5e-2)
    assert jnp.allclose(bbox_deltas.astype(jnp.float32), ref_bbox, atol=5e-2, rtol=5e-2)

    print("KERNEL_OK")
</pallas_src>

<mosaic_0001>
module attributes {stable_mosaic.version = 11 : i64} {
  func.func @_predictor_kernel(%arg0: i32, %arg1: memref<16x256xf32, #tpu.memory_space<vmem>>, %arg2: memref<256x128xf32, #tpu.memory_space<vmem>>, %arg3: memref<1x128xf32, #tpu.memory_space<vmem>>, %arg4: memref<16x128xf32, #tpu.memory_space<vmem>>) attributes {dimension_semantics = [#tpu.dimension_semantics<parallel>], iteration_bounds = array<i64: 2>, scalar_prefetch = 0 : i64, scratch_operands = 0 : i64, tpu.core_type = #tpu.core_type<tc>, window_params = [{transform_indices = @transform_0, window_bounds = array<i64: 16, 256>}, {pipeline_mode = #tpu.pipeline_mode<synchronous>, transform_indices = @transform_1, window_bounds = array<i64: 256, 128>}, {pipeline_mode = #tpu.pipeline_mode<synchronous>, transform_indices = @transform_2, window_bounds = array<i64: 1, 128>}, {transform_indices = @transform_3, window_bounds = array<i64: 16, 128>}]} {
    %c0 = arith.constant 0 : index
    %c0_0 = arith.constant 0 : index
    %0 = vector.load %arg1[%c0, %c0_0] : memref<16x256xf32, #tpu.memory_space<vmem>>, vector<16x256xf32>
    %c0_1 = arith.constant 0 : index
    %c0_2 = arith.constant 0 : index
    %1 = vector.load %arg2[%c0_1, %c0_2] : memref<256x128xf32, #tpu.memory_space<vmem>>, vector<256x128xf32>
    %cst = arith.constant dense<0.000000e+00> : vector<16x128xf32>
    %2 = tpu.matmul %0, %1, %cst {dimension_numbers = #tpu.dot_dimension_numbers<[1], [0], [0], [1], [0, 0, 1, 1], [], []>} : vector<16x256xf32>, vector<256x128xf32>, vector<16x128xf32> -> vector<16x128xf32>
    %c0_3 = arith.constant 0 : index
    %c0_4 = arith.constant 0 : index
    %3 = vector.load %arg3[%c0_3, %c0_4] : memref<1x128xf32, #tpu.memory_space<vmem>>, vector<1x128xf32>
    %4 = vector.broadcast %3 : vector<1x128xf32> to vector<16x128xf32>
    %5 = arith.addf %2, %4 : vector<16x128xf32>
    %c0_5 = arith.constant 0 : index
    %c0_6 = arith.constant 0 : index
    %6 = vector.load %arg4[%c0_5, %c0_6] : memref<16x128xf32, #tpu.memory_space<vmem>>, vector<16x128xf32>
    tpu.vector_store %arg4[%c0_5, %c0_6], %5 {strides = array<i32>} : memref<16x128xf32, #tpu.memory_space<vmem>>, vector<16x128xf32>,
    return
  }
  func.func @transform_0(%arg0: i32) -> (i32, i32) {
    %c0_i32 = arith.constant 0 : i32
    %c0_i32_0 = arith.constant 0 : i32
    return %arg0, %c0_i32 : i32, i32
  }
  func.func @transform_1(%arg0: i32) -> (i32, i32) {
    %c0_i32 = arith.constant 0 : i32
    %c0_i32_0 = arith.constant 0 : i32
    %c0_i32_1 = arith.constant 0 : i32
    return %c0_i32, %c0_i32_0 : i32, i32
  }
  func.func @transform_2(%arg0: i32) -> (i32, i32) {
    %c0_i32 = arith.constant 0 : i32
    %c0_i32_0 = arith.constant 0 : i32
    %c0_i32_1 = arith.constant 0 : i32
    return %c0_i32, %c0_i32_0 : i32, i32
  }
  func.func @transform_3(%arg0: i32) -> (i32, i32) {
    %c0_i32 = arith.constant 0 : i32
    %c0_i32_0 = arith.constant 0 : i32
    return %arg0, %c0_i32 : i32, i32
  }
}

</mosaic_0001>

<bundles_post_ra>
// kernel: _predictor_forward_impl.1
= control target key start
LH: loop header
LB: loop body
LE: loop exit
PB: predicated region body
PF: predicated region fallthrough
CT: control target
= control target key end

     0   :  { %8 = vsyncpa [#allocation3], 0  ;;  %s1202_s0 = inlined_call_operand.hbm [shape: f32[20,256], index: 0, kind: input, shape index: {}]   ;;  %s1203_s1 = inlined_call_operand.hbm [shape: f32[256,128], index: 1, kind: input, shape index: {}]   ;;  %s1204_s2 = inlined_call_operand.vmem [shape: f32[1,128], index: 2, kind: input, shape index: {}]   ;;  %s1205_s3 = inlined_call_operand.vmem [shape: f32[20,128], index: 3, kind: output, shape index: {}]  }
   0x1   :  { %10 = vsyncpa [#allocation3 + $0x1], 0 }
   0x2   :  { %11 = vsyncpa [#allocation5], 0  ;;  %s1004_s12 = smov 0   ;;  %s1006_s13 = smov 0  }
   0x3   :  { %s1008_s14 = smov 0   ;;  %s1010_s15 = smov 0  }
   0x4 LB: > { %s1023_s16 = sadd.s32 4294967295, %s944_s15   ;;  %s1026_s17 = sadd.s32 1, %s944_s15   ;;  %s944_s15 = sphi %s1010_s15, %s1223_s15   ;;  %s940_s14 = sphi %s1008_s14, %s1222_s14   ;;  %s936_s13 = sphi %s1006_s13, %s1221_s13   ;;  %s932_s12 = sphi %s1004_s12, %s1220_s12  }
   0x5   : > { %s21_s18 = ssub.s32 %s944_s15, %s1026_s17  ;;  %s24_s19 = sadd.s32 1, %s940_s14 }
   0x6   : > { %p22_p0 = scmp.eq.s32.totalorder %s21_s18, 0  ;;  %p31_p1 = scmp.ne.s32.totalorder %s940_s14, %s936_s13 }
   0x7   : > { %p32_p2 = scmp.eq.s32.totalorder %s944_s15, 0  ;;  %p37_p3 = scmp.ne.s32.totalorder %s936_s13, %s932_s12 }
   0x8   : > { %s1036_s20 = scalar_select %p22_p0, %s940_s14, %s24_s19  }
   0x9   : > { %p1038_p4 = por %p32_p2, %p31_p1  ;;  %p1206_p5 = scmp.eq.s32.totalorder %s1023_s16, 0 }
   0xa   : > { %p103_p6 = scmp.eq.s32.totalorder %s1023_s16, 1  ;;  %p580_p7 = scmp.ge.s32.totalorder %s944_s15, 1 }
   0xb   : > { %s1209_s21 = scalar_select %p1038_p4, 1, 0 }
   0xc   : > { %p1047_p8 = por %p1206_p5, %p37_p3  ;;  %p116_p9 = scmp.lt.s32.totalorder %s944_s15, 3 }
   0xd   : > { %p1052_p10 = por %p103_p6, %p31_p1  ;;  %s978_s25 = smov [#allocation4]  }
   0xe   : > { %s1210_s22 = scalar_select %p1047_p8, 1, 0 }
   0xf   : > { %s1211_s23 = scalar_select %p1052_p10, 1, 0 }
  0x10   : > { %p1056_p11 = pnand %p580_p7, %p116_p9  ;;  %s128_s26 = sshll.u32 %s978_s25, 4  ;;  %s129_s26 = int_to_ptr.vmem [resolvable:$true] %s128_s26 }
  0x11   : > { %s818_s30 = scalar_lea.hbm %s1203_s1, 4096 }
  0x12   : > { %s1212_s24 = scalar_select %p1056_p11, 1, 0 }
  0x13   : > { %p711_p12 = pneg %p1056_p11  ;;  %p819_p0 = scmp.ne.s32.totalorder %s1203_s1, %s818_s30 }
  0x14   : > { %p825_p6 = scmp.lt.u32.totalorder %s818_s30, %s1203_s1 }
  0x15   : > { %p1064_p13 = pnand %p711_p12, %p1206_p5 }
  0x17   : > { %p820_p1 = pneg %p1064_p13 }
  0x19   : > { %p821_p2 = pnand %p820_p1, %p819_p0 }
  0x1b   : > { %p822_p3 = pneg %p821_p2 }
  0x1d   : > { %p827_p7 = pnand %p825_p6, %p822_p3 }
  0x1f   : > { %830 = shalt.err (!%p827_p7)
}
  0x20   : > { %s831_s8 = scalar_lea.vmem %s129_s26, 4096  ;;  %p839_p10 = scmp.lt.s32.totalorder %s129_s26, %s129_s26 }
  0x21   : > { %p832_p9 = scmp.ne.s32.totalorder %s129_s26, %s831_s8  ;;  %p840_p8 = scmp.lt.s32.totalorder %s831_s8, %s831_s8 }
  0x23   : > { %p834_p12 = pnand %p832_p9, %p820_p1  ;;  %p841_p11 = por %p840_p8, %p839_p10 }
  0x25   : > { %p835_p5 = pneg %p834_p12 }
  0x27   : > { %p842_p4 = pnand %p841_p11, %p835_p5 }
  0x29   : > { %845 = shalt.err (!%p842_p4)
}
  0x2a   : > { %s979_s9 = smov 128   ;;  %s980_s10 = smov 8  }
  0x2b   : > { %714 = dma.hbm_to_vmem [thread:$0]  (!%p1064_p13), %s1203_s1, 4096, %s129_s26, [#allocation5], %s979_s9, %s979_s9, %s980_s10  }
  0x2c   : > { %p582_p0 = scmp.ge.s32.totalorder %s944_s15, 2 }
  0x2d   : > { %p1214_p2 = scmp.ne.s32.totalorder (!%p582_p0), %s1209_s21, 0 }
  0x2e   : > { %141 = sbr.rel (%p582_p0) target bundleno = 88 (0x58), region = 24 }
  0x35   : > { %144 = sbr.rel (!%p1214_p2) target bundleno = 88 (0x58), region = 28  ;;  %s145_s18 = sand.u32 (%p1214_p2), 1, %s940_s14  }
  0x36   : > { %s584_s19 = sshll.u32 (%p1214_p2), %s944_s15, 1  ;;  %s583_s25 = sshll.u32 (%p1214_p2), %s145_s18, 5 }
  0x37   : > { %s151_s28 = ssub.s32 (%p1214_p2), 3, %s584_s19  ;;  %s1092_s30 = scalar_lea.sflag (%p1214_p2), [#allocation3], %s145_s18 }
  0x38   : > { %p152_p4 = scmp.lt.s32.totalorder (%p1214_p2), %s151_s28, 2  ;;  %s149_s26 = scalar_lea.vmem (%p1214_p2), [#allocation2], %s583_s25 }
  0x3c   : > { %s1225_s28 = smov (!%p152_p4, %s151_s28), 2 }
  0x3d   : > { %s1089_s29 = sshll.u32 %s1225_s28, 8 }
  0x3e   : > { %s157_s27 = ssub.s32 512, %s1089_s29 }
  0x3f   : > { %158 = vsyncadd %s1092_s30, %s157_s27  ;;  %p587_p5 = scmp.ne.s32.totalorder %s1089_s29, 0  ;;  %s616_s21 = sshll.u32 %s944_s15, 9 }
  0x40   : > { %s1100_s6 = scalar_lea.hbm %s1202_s0, %s616_s21  ;;  %s164_s7 = sshll.u32 %s149_s26, 4  ;;  %s1102_s7 = int_to_ptr.vmem [resolvable:$true] %s164_s7 }
  0x41   : > { %s846_s8 = scalar_lea.hbm %s1100_s6, %s1089_s29  ;;  %s850_s15 = scalar_lea.hbm %s1202_s0, 768 }
  0x42   : > { %p847_p8 = scmp.ne.s32.totalorder %s1100_s6, %s846_s8  ;;  %p851_p13 = scmp.lt.u32.totalorder %s1100_s6, %s1202_s0 }
  0x43   : > { %p852_p1 = scmp.lt.u32.totalorder %s850_s15, %s846_s8  ;;  %p854_p6 = scmp.lt.u32.totalorder %s846_s8, %s1100_s6 }
  0x44   : > { %p848_p10 = pnand %p847_p8, %p587_p5 }
  0x45   : > { %p853_p3 = por %p852_p1, %p851_p13 }
  0x46   : > { %p849_p11 = pneg %p848_p10 }
  0x47   : > { %p855_p7 = por %p854_p6, %p853_p3 }
  0x49   : > { %p856_p9 = pnand %p855_p7, %p849_p11 }
  0x4b   : > { %859 = shalt.err (!%p856_p9)
}
  0x4c   : > { %s860_s18 = scalar_lea.vmem %s1102_s7, %s1089_s29  ;;  %s981_s19 = smov [#allocation2]  }
  0x4d   : > { %p861_p12 = scmp.ne.s32.totalorder %s1102_s7, %s860_s18  ;;  %s864_s25 = sshll.u32 %s981_s19, 4  ;;  %s865_s25 = int_to_ptr.vmem [resolvable:$false] %s864_s25 }
  0x4e   : > { %s866_s28 = scalar_lea.vmem %s865_s25, 1024  ;;  %p867_p4 = scmp.lt.s32.totalorder %s1102_s7, %s865_s25 }
  0x4f   : > { %p862_p0 = pnand %p861_p12, %p587_p5  ;;  %p868_p8 = scmp.lt.s32.totalorder %s866_s28, %s860_s18 }
  0x51   : > { %p863_p2 = pneg %p862_p0  ;;  %p869_p10 = por %p868_p8, %p867_p4 }
  0x53   : > { %p870_p13 = pnand %p869_p10, %p863_p2 }
  0x55   : > { %873 = shalt.err (!%p870_p13)
}
  0x56   : > { %s982_s27 = smov 256   ;;  %s983_s26 = smov 16  }
  0x57   : > { %170 = dma.hbm_to_vmem [thread:$0]  (%p587_p5), %s1100_s6, %s1089_s29, %s1102_s7, %s1092_s30, %s982_s27, %s982_s27, %s983_s26  }
  0x58 PF: > { %p1215_p11 = scmp.ne.s32.totalorder %s1212_s24, 0 }
  0x59   : > { %s1132_s21 = sand.u32 (!%p1215_p11), 1, %s936_s13   ;;  %p1216_p1 = scmp.ne.s32.totalorder (!%p1215_p11), %s1210_s22, 0 }
  0x5a   : > { %176 = sbr.rel (%p1215_p11) target bundleno = 403 (0x193), region = 32  ;;  %s593_s4 = sshll.u32 (!%p1215_p11), %s1132_s21, 5 }
  0x5b   : > { %s179_s5 = scalar_lea.sflag (!%p1215_p11), [#allocation3], %s1132_s21  ;;  %s1136_s8 = scalar_lea.vmem (!%p1215_p11), [#allocation2], %s593_s4 }
  0x61   : > { %923 = dma.done.wait (%p1216_p1), %s179_s5, 512  }
  0x62   : > { %925 = vsyncadd (%p1216_p1), %s179_s5, 4294966784  ;;  %p1217_p5 = scmp.eq.s32.totalorder %s1023_s16, 0 }
  0x64   : > { %927 = dma.done.wait (%p1217_p5), [#allocation5], 4096   ;;  %p1218_p3 = pmov %p1217_p5 }
  0x65   : > { %v239_v0 = vld [vmem:[#allocation4 + $0x80] sm:$0xff]  ;;  %v240_v1 = vld [vmem:[#allocation4 + $0x88] sm:$0xff]  ;;  %v241_v5 = vld [vmem:[#allocation4 + $0x90] sm:$0xff]  ;;  %s595_s22 = sshll.u32 %s1132_s21, 4  ;;  %p1219_p6 = scmp.ne.s32.totalorder %s1211_s23, 0 }
  0x66   : > { %929 = vsyncadd (%p1218_p3), [#allocation5], 4294963200  ;;  %v223_v2 = vld [vmem:[#allocation4] sm:$0xff]  ;;  %v658_v3 = vpack.c.bf16 %v240_v1, %v239_v0  ;;  %v224_v4 = vld [vmem:[#allocation4 + $0x8] sm:$0xff]  ;;  %s1154_s30 = scalar_lea.vmem [#allocation6], %s595_s22   ;;  %s598_s6 = sshll.u32 (%p1219_p6), %s1023_s16, 1 }
  0x67   : > { %v242_v6 = vld [vmem:[#allocation4 + $0x98] sm:$0xff]  ;;  %v660_v7 = vpack.c.bf16 %v224_v4, %v223_v2  ;;  %v225_v9 = vld [vmem:[#allocation4 + $0x10] sm:$0xff]  ;;  %v243_v11 = vld [vmem:[#allocation4 + $0xa0] sm:$0xff]  ;;  %s617_s7 = sshll.u32 (%p1219_p6), %s1023_s16, 4  ;;  %s347_s9 = ssub.s32 (%p1219_p6), 3, %s598_s6 }
  0x68   : > { %v662_v8 = vpack.c.bf16 %v242_v6, %v241_v5  ;;  %v226_v10 = vld [vmem:[#allocation4 + $0x18] sm:$0xff]  ;;  %659 = vmatprep.subr.bf16.mxu0 %v658_v3  ;;  %690 = vmatprep.subr.bf16.mxu1 %v658_v3  ;;  %v244_v12 = vld [vmem:[#allocation4 + $0xa8] sm:$0xff]  ;;  %v227_v15 = vld [vmem:[#allocation4 + $0x20] sm:$0xff]  ;;  %s1165_s11 = scalar_lea.vmem (%p1219_p6), %s1205_s3, %s617_s7   ;;  %p348_p7 = scmp.lt.s32.totalorder (%p1219_p6), %s347_s9, 2 }
  0x69   : > { %661 = vmatpush3.bf16.msra.mxu0 %v660_v7  ;;  %698 = vmatpush3.bf16.msra.mxu1 %v660_v7  ;;  %v664_v13 = vpack.c.bf16 %v226_v10, %v225_v9  ;;  %v666_v14 = vpack.c.bf16 %v244_v12, %v243_v11  ;;  %v228_v16 = vld [vmem:[#allocation4 + $0x28] sm:$0xff]  ;;  %v245_v17 = vld [vmem:[#allocation4 + $0xb0] sm:$0xff]  ;;  %v246_v18 = vld [vmem:[#allocation4 + $0xb8] sm:$0xff] }
  0x6a   : > { %663 = vmatprep.subr.bf16.mxu0 %v662_v8  ;;  %691 = vmatprep.subr.bf16.mxu1 %v662_v8  ;;  %v668_v19 = vpack.c.bf16 %v228_v16, %v227_v15  ;;  %v670_v20 = vpack.c.bf16 %v246_v18, %v245_v17  ;;  %v229_v21 = vld [vmem:[#allocation4 + $0x30] sm:$0xff]  ;;  %v230_v22 = vld [vmem:[#allocation4 + $0x38] sm:$0xff]  ;;  %v247_v23 = vld [vmem:[#allocation4 + $0xc0] sm:$0xff] }
  0x6b   : > { %v248_v24 = vld [vmem:[#allocation4 + $0xc8] sm:$0xff]  ;;  %v222_v26 = vld [vmem:[%s1136_s8 + $0x18] sm:$0xff]  ;;  %v672_v27 = vpack.c.bf16 %v230_v22, %v229_v21  ;;  %v231_v29 = vld [vmem:[#allocation4 + $0x40] sm:$0xff] }
  0x6c   : > { %v220_v25 = vld [vmem:[%s1136_s8 + $0x8] sm:$0xff]  ;;  %v674_v28 = vpack.c.bf16 %v248_v24, %v247_v23  ;;  %v249_v31 = vld [vmem:[#allocation4 + $0xd0] sm:$0xff]  ;;  %v250_v32 = vld [vmem:[#allocation4 + $0xd8] sm:$0xff]  ;;  %331 = vmatprep.mubr.f32.mxu1 %v222_v26 }
  0x6d   : > { %665 = vmatpush3.bf16.msra.mxu0 %v664_v13  ;;  %699 = vmatpush3.bf16.msra.mxu1 %v664_v13  ;;  %v232_v30 = vld [vmem:[#allocation4 + $0x48] sm:$0xff]  ;;  %v678_v34 = vpack.c.bf16 %v250_v32, %v249_v31  ;;  %v233_v35 = vld [vmem:[#allocation4 + $0x50] sm:$0xff]  ;;  %v234_v36 = vld [vmem:[#allocation4 + $0x58] sm:$0xff] }
  0x6e   : > { %667 = vmatprep.subr.bf16.mxu0 %v666_v14  ;;  %692 = vmatprep.subr.bf16.mxu1 %v666_v14  ;;  %v676_v33 = vpack.c.bf16 %v232_v30, %v231_v29  ;;  %v251_v37 = vld [vmem:[#allocation4 + $0xe0] sm:$0xff]  ;;  %v252_v38 = vld [vmem:[#allocation4 + $0xe8] sm:$0xff]  ;;  %v680_v39 = vpack.c.bf16 %v234_v36, %v233_v35  ;;  %v253_v43 = vld [vmem:[#allocation4 + $0xf0] sm:$0xff] }
  0x6f   : > { %326 = vmatprep.mubr.f32.mxu0 %v220_v25  ;;  %v682_v40 = vpack.c.bf16 %v252_v38, %v251_v37  ;;  %v235_v41 = vld [vmem:[#allocation4 + $0x60] sm:$0xff]  ;;  %v236_v42 = vld [vmem:[#allocation4 + $0x68] sm:$0xff]  ;;  %v254_v44 = vld [vmem:[#allocation4 + $0xf8] sm:$0xff] }
  0x70   : > { %v684_v45 = vpack.c.bf16 %v236_v42, %v235_v41  ;;  %v686_v46 = vpack.c.bf16 %v254_v44, %v253_v43  ;;  %v237_v47 = vld [vmem:[#allocation4 + $0x70] sm:$0xff]  ;;  %v238_v48 = vld [vmem:[#allocation4 + $0x78] sm:$0xff]  ;;  %v219_v50 = vld [vmem:[%s1136_s8] sm:$0xff] }
  0x71   : > { %669 = vmatpush3.bf16.msra.mxu0 %v668_v19  ;;  %700 = vmatpush3.bf16.msra.mxu1 %v668_v19  ;;  %v688_v49 = vpack.c.bf16 %v238_v48, %v237_v47  ;;  %v221_v51 = vld [vmem:[%s1136_s8 + $0x10] sm:$0xff]  ;;  %v596_v54 = vld [vmem:[%s1204_s2] ss:$0 sm:$0xff] }
  0x72   : > { %671 = vmatprep.subr.bf16.mxu0 %v670_v20  ;;  %693 = vmatprep.subr.bf16.mxu1 %v670_v20 }
  0x75   : > { %673 = vmatpush3.bf16.msra.mxu0 %v672_v27  ;;  %701 = vmatpush3.bf16.msra.mxu1 %v672_v27 }
  0x76   : > { %675 = vmatprep.subr.bf16.mxu0 %v674_v28  ;;  %694 = vmatprep.subr.bf16.mxu1 %v674_v28 }
  0x79   : > { %677 = vmatpush3.bf16.msra.mxu0 %v676_v33  ;;  %702 = vmatpush3.bf16.msra.mxu1 %v676_v33 }
  0x7a   : > { %679 = vmatprep.subr.bf16.mxu0 %v678_v34  ;;  %695 = vmatprep.subr.bf16.mxu1 %v678_v34 }
  0x7d   : > { %681 = vmatpush3.bf16.msra.mxu0 %v680_v39  ;;  %703 = vmatpush3.bf16.msra.mxu1 %v680_v39 }
  0x7e   : > { %683 = vmatprep.subr.bf16.mxu0 %v682_v40  ;;  %696 = vmatprep.subr.bf16.mxu1 %v682_v40 }
  0x81   : > { %685 = vmatpush3.bf16.msra.mxu0 %v684_v45  ;;  %704 = vmatpush3.bf16.msra.mxu1 %v684_v45 }
  0x82   : > { %687 = vmatprep.subr.bf16.mxu0 %v686_v46  ;;  %697 = vmatprep.subr.bf16.mxu1 %v686_v46 }
  0x85   : > { %689 = vmatpush3.bf16.msra.mxu0 %v688_v49  ;;  %705 = vmatpush3.bf16.msra.mxu1 %v688_v49 }
  0x88   : > { %327 = vmatmul.mubr.f32.vlgmr.msra.gmra.mrb[0].mxu0 %v219_v50  ;;  %332 = vmatmul.mubr.f32.vlgmr.msra.gmra.mrb[0].mxu1 %v221_v51 }
 0x15b   : > { %v652_v52 = vpop.f32.mrb[0].mxu0  ;;  %v655_v53 = vpop.f32.mrb[0].mxu1  ;;  %345 = sbr.rel (!%p1219_p6) target bundleno = 403 (0x193), region = 44 }
 0x15c   : > { %v653_v55 = vpop.f32.mrb[1].mxu0  ;;  %v656_v56 = vpop.f32.mrb[1].mxu1 }
 0x15d   : > { %v654_v57 = vadd.f32 %v653_v55, %v652_v52  ;;  %v657_v58 = vadd.f32 %v656_v56, %v655_v53 }
 0x15f   : > { %v329_v59 = vadd.f32 %v654_v57, %v596_v54  ;;  %v334_v60 = vadd.f32 %v657_v58, %v596_v54 }
 0x161   : > { %337 = vst [vmem:[%s1154_s30] sm:$0xff] %v329_v59  ;;  %338 = vst [vmem:[%s1154_s30 + $0x8] sm:$0xff] %v334_v60 }
 0x162   : > { %s1227_s9 = smov (!%p348_p7, %s347_s9), 2 }
 0x163   : > { %s599_s12 = sshll.u32 %s1227_s9, 7 }
 0x164   : > { %p602_p9 = scmp.eq.s32.totalorder %s599_s12, 0 }
 0x165   : > { %s1171_s23 = sshrl.u32 (!%p602_p9), %s1227_s9, 1 }
 0x166   : > { %356 = sbr.rel (%p602_p9) target bundleno = 403 (0x193), region = 48  ;;  %p603_p12 = scmp.le.s32.totalorder (!%p602_p9), %s1171_s23, 0 }
 0x16d   : > { %523 = sbr.rel (%p603_p12) target bundleno = 382 (0x17e), region = 130  ;;  %s946_s16 = smov (!%p603_p12), %s1165_s11  }
 0x16e   : > { %s950_s18 = smov (!%p603_p12), %s1154_s30   ;;  %s954_s19 = smov (!%p603_p12), 0  }
 0x16f   : > { %s958_s25 = smov (!%p603_p12), 0  }
 0x174 LB: >> { %v420_v61 = vld [vmem:[%s952_s18] sm:$0xff]  ;;  %v422_v62 = vld [vmem:[%s952_s18 + $0x8] sm:$0xff]  ;;  %s424_s28 = sadd.s32 1, %s956_s19  ;;  %s414_s25 = sadd.s32 1, %s960_s25   ;;  %s960_s25 = sphi %s958_s25, %s414_s25   ;;  %s956_s19 = sphi %s954_s19, %s955_s19   ;;  %s952_s18 = sphi %s950_s18, %s429_s18   ;;  %s948_s16 = sphi %s946_s16, %s430_s16  }
 0x175   : >> { %421 = vst [vmem:[%s948_s16] sm:$0xff] %v420_v61  ;;  %423 = vst [vmem:[%s948_s16 + $0x8] sm:$0xff] %v422_v62  ;;  %p425_p0 = scmp.ge.s32.totalorder %s424_s28, %s1171_s23  ;;  %p413_p2 = scmp.ge.s32.totalorder %s414_s25, %s1171_s23 }
 0x177   : >> { %s1229_s28 = smov (%p425_p0, %s424_s28), 0  ;;  %416 = sbr.rel (!%p413_p2) target bundleno = 372 (0x174), region = 136 }
 0x178   : >> { %s604_s27 = sshll.u32 %s1229_s28, 4  ;;  %s955_s19 = smov %s1229_s28  }
 0x179   : >> { %s429_s18 = scalar_lea.vmem %s1154_s30, %s604_s27 [#allocation6]   ;;  %s430_s16 = scalar_lea.vmem %s1165_s11, %s604_s27  }
 0x17e PF: > { %s1181_s26 = sand.u32 1, %s1227_s9   ;;  %s618_s21 = sshll.u32 %s1171_s23, 4 }
 0x17f   : > { %s435_s4 = scalar_lea.vmem %s1154_s30, %s618_s21 [#allocation6]   ;;  %s437_s5 = scalar_lea.vmem %s1165_s11, %s618_s21  }
 0x180   : > { %p609_p4 = scmp.le.s32.totalorder %s1181_s26, 0 }
 0x181   : > { %s962_s8 = smov (!%p609_p4), %s437_s5   ;;  %s966_s22 = smov (!%p609_p4), %s435_s4  }
 0x182   : > { %537 = sbr.rel (%p609_p4) target bundleno = 403 (0x193), region = 141  ;;  %s970_s24 = smov (!%p609_p4), 0  }
 0x183   : > { %s974_s29 = smov (!%p609_p4), 0  }
 0x189 LB: >> { %v447_v63 = vld [vmem:[%s968_s22] sm:$0xff]  ;;  %s449_s6 = sadd.s32 1, %s972_s24  ;;  %s441_s29 = sadd.s32 1, %s976_s29   ;;  %s976_s29 = sphi %s974_s29, %s441_s29   ;;  %s972_s24 = sphi %s970_s24, %s971_s24   ;;  %s968_s22 = sphi %s966_s22, %s454_s22   ;;  %s964_s8 = sphi %s962_s8, %s455_s8  }
 0x18a   : >> { %448 = vst [vmem:[%s964_s8] sm:$0xff] %v447_v63  ;;  %p450_p8 = scmp.ge.s32.totalorder %s449_s6, %s1181_s26  ;;  %p440_p10 = scmp.ge.s32.totalorder %s441_s29, %s1181_s26 }
 0x18c   : >> { %s1231_s6 = smov (%p450_p8, %s449_s6), 0  ;;  %443 = sbr.rel (!%p440_p10) target bundleno = 393 (0x189), region = 147 }
 0x18d   : >> { %s610_s30 = sshll.u32 %s1231_s6, 3  ;;  %s971_s24 = smov %s1231_s6  }
 0x18e   : >> { %s454_s22 = scalar_lea.vmem %s435_s4, %s610_s30 [#allocation6]   ;;  %s455_s8 = scalar_lea.vmem %s437_s5, %s610_s30  }
 0x193 PF: > { %p14_p13 = scmp.ge.s32.totalorder %s1026_s17, 4   ;;  %s1220_s12 = smov %s936_s13 }
 0x194   : > { %s1221_s13 = smov %s940_s14  ;;  %s1222_s14 = smov %s1036_s20 }
 0x195   : > { %s1223_s15 = smov %s1026_s17  ;;  %16 = sbr.rel (!%p14_p13) target bundleno = 4 (0x4), region = 158 }
 0x19c   :  { %471 = vsyncpa [#allocation3], 1 }
 0x19d   :  { %473 = vsyncpa [#allocation3 + $0x1], 1 }
 0x19e   :  { %474 = vsyncpa [#allocation5], 1 }

</bundles_post_ra>
